<compile_context>
chip_gen: v6e
topology: v6e:2x2x1
jax: 0.10.0
libtpu: 0.0.40
codegen_flags: <defaults>
</compile_context>

<pallas_src>
import functools

import jax
import jax.numpy as jnp
from jax import lax
from jax.experimental import pallas as pl
from jax.experimental.pallas import tpu as pltpu


# ------------------------------------------------------------------
# helpers
# ------------------------------------------------------------------
def _round_up(x, m):
    return (x + m - 1) // m * m


def _pick_tb(T, max_tb=32):
    """Largest divisor of T that is <= max_tb (time steps per grid step)."""
    tb = min(T, max_tb)
    while T % tb:
        tb -= 1
    return tb


def _pad_gate_cols(w, H, Hp):
    """(rows, 4H) -> (rows, 4Hp): gate k placed at columns [k*Hp, k*Hp + H)."""
    if Hp == H:
        return w
    rows = w.shape[0]
    out = jnp.zeros((rows, 4 * Hp), w.dtype)
    for k in range(4):
        out = out.at[:, k * Hp:k * Hp + H].set(w[:, k * H:(k + 1) * H])
    return out


# ------------------------------------------------------------------
# Kernel 1: fused concrete dropout + input projection (one big matmul)
# ------------------------------------------------------------------
def _proj_kernel(scal_ref, u_ref, x_ref, w_ref, b_ref, gx_ref, *, apply_dropout):
    xv = x_ref[...]                                            # (tn, I) f32
    if apply_dropout:
        eps = jnp.float32(1e-7)
        inv_temp = jnp.float32(10.0)                           # 1 / temp, temp = 0.1
        logit_p = scal_ref[0]                                  # log(p+eps) - log(1-p+eps)
        inv_retain = scal_ref[1]                               # 1 / (1 - p)
        u = u_ref[...]
        drop_logit = (logit_p + jnp.log(u + eps) - jnp.log(1.0 - u + eps)) * inv_temp
        keep = (1.0 - jax.nn.sigmoid(drop_logit)) * inv_retain
        xv = xv * keep
    gx_ref[...] = (jnp.dot(xv.astype(jnp.bfloat16), w_ref[...],
                           preferred_element_type=jnp.float32)
                   + b_ref[...])


# ------------------------------------------------------------------
# Kernel 2: recurrent LSTM.  PyTorch gate order: i, f, g, o.
# ------------------------------------------------------------------
def _lstm_kernel(gx_ref, whh_ref, y_ref, hn_ref, cn_ref, h_scr, c_scr):
    tb_idx = pl.program_id(0)

    @pl.when(tb_idx == 0)
    def _():
        h_scr[...] = jnp.zeros_like(h_scr)
        c_scr[...] = jnp.zeros_like(c_scr)

    Tb = gx_ref.shape[0]
    Hp = h_scr.shape[1]

    def step(s, carry):
        h, c = carry
        gates = gx_ref[s] + jnp.dot(h.astype(jnp.bfloat16), whh_ref[...],
                                    preferred_element_type=jnp.float32)  # (Bp, 4Hp)
        i_g = jax.nn.sigmoid(gates[:, 0:Hp])
        f_g = jax.nn.sigmoid(gates[:, Hp:2 * Hp])
        g_g = jnp.tanh(gates[:, 2 * Hp:3 * Hp])
        o_g = jax.nn.sigmoid(gates[:, 3 * Hp:4 * Hp])
        c_new = f_g * c + i_g * g_g
        h_new = o_g * jnp.tanh(c_new)
        y_ref[s] = h_new.astype(y_ref.dtype)
        return h_new, c_new

    h, c = lax.fori_loop(0, Tb, step, (h_scr[...], c_scr[...]), unroll=True)
    h_scr[...] = h
    c_scr[...] = c

    @pl.when(tb_idx == pl.num_programs(0) - 1)
    def _():
        hn_ref[...] = h
        cn_ref[...] = c


# ------------------------------------------------------------------
# Module-equivalent wrapper
# ------------------------------------------------------------------
def lstm_with_cdropout(x, params, *, use_dropout=True, seed=0):
    """x: (B, T, I) f32 (batch_first).  Returns y (B,T,H), (h_n, c_n) each (1,B,H)."""
    w_ih, w_hh = params["w_ih"], params["w_hh"]
    bias_raw = params["b_ih"] + params["b_hh"]
    p_logit = params["p_logit"]

    B, T, I = x.shape
    H4, H = w_hh.shape
    assert H4 == 4 * H
    eps = 1e-7

    Bp = _round_up(B, 8)          # sublane-aligned batch
    Hp = _round_up(H, 128)        # lane-aligned hidden (gate blocks at k*Hp)

    # ---- host-side prep (hoisted out of the kernels) --------------------
    wih_t = _pad_gate_cols(w_ih.T.astype(jnp.float32), H, Hp).astype(jnp.bfloat16)   # (I, 4Hp)
    whh_t = _pad_gate_cols(w_hh.T.astype(jnp.float32), H, Hp)                        # (H, 4Hp)
    whh_t = jnp.pad(whh_t, ((0, Hp - H), (0, 0))).astype(jnp.bfloat16)                # (Hp, 4Hp)
    bias = _pad_gate_cols(bias_raw.reshape(1, 4 * H).astype(jnp.float32), H, Hp)      # (1, 4Hp)

    p = jax.nn.sigmoid(p_logit.reshape(()).astype(jnp.float32))
    scal = jnp.stack([jnp.log(p + eps) - jnp.log(1.0 - p + eps),
                      1.0 / (1.0 - p)]).astype(jnp.float32)                           # (2,)

    # time-major, batch-padded input, flattened for the big projection matmul
    xt = jnp.transpose(x, (1, 0, 2)).astype(jnp.float32)       # (T, B, I)
    xt = jnp.pad(xt, ((0, 0), (0, Bp - B), (0, 0)))            # (T, Bp, I)
    N = T * Bp
    tn = min(256, _round_up(N, 8))
    Np = _round_up(N, tn)
    x2 = jnp.pad(xt.reshape(N, I), ((0, Np - N), (0, 0)))      # (Np, I)

    if use_dropout:
        u = jax.random.uniform(jax.random.PRNGKey(seed), (Np, I), jnp.float32)
    else:
        u = jnp.full((Np, I), 0.5, jnp.float32)                # unused by the kernel

    # ---- kernel 1: fused dropout + input projection ---------------------
    gx = pl.pallas_call(
        functools.partial(_proj_kernel, apply_dropout=use_dropout),
        out_shape=jax.ShapeDtypeStruct((Np, 4 * Hp), jnp.float32),
        grid=(Np // tn,),
        in_specs=[
            pl.BlockSpec(memory_space=pltpu.MemorySpace.SMEM),         # scal (2,)
            pl.BlockSpec((tn, I), lambda i: (i, 0)),                   # noise tile
            pl.BlockSpec((tn, I), lambda i: (i, 0)),                   # x tile
            pl.BlockSpec(memory_space=pltpu.MemorySpace.VMEM),         # W_ih^T (loop-invariant)
            pl.BlockSpec(memory_space=pltpu.MemorySpace.VMEM),         # bias   (loop-invariant)
        ],
        out_specs=pl.BlockSpec((tn, 4 * Hp), lambda i: (i, 0)),        # lane-dense output
        compiler_params=pltpu.CompilerParams(
            dimension_semantics=("parallel",)),
    )(scal, u, x2, wih_t, bias)

    gx = gx[:N].reshape(T, Bp, 4 * Hp)                                 # time-major gates_x

    # ---- kernel 2: recurrence over time, Tb steps per grid step ---------
    Tb = _pick_tb(T)
    y, hn, cn = pl.pallas_call(
        _lstm_kernel,
        out_shape=(
            jax.ShapeDtypeStruct((T, Bp, Hp), jnp.float32),
            jax.ShapeDtypeStruct((Bp, Hp), jnp.float32),
            jax.ShapeDtypeStruct((Bp, Hp), jnp.float32),
        ),
        grid=(T // Tb,),
        in_specs=[
            pl.BlockSpec((Tb, Bp, 4 * Hp), lambda t: (t, 0, 0)),       # gates_x block
            pl.BlockSpec(memory_space=pltpu.MemorySpace.VMEM),         # W_hh^T (loop-invariant)
        ],
        out_specs=(
            pl.BlockSpec((Tb, Bp, Hp), lambda t: (t, 0, 0)),
            pl.BlockSpec((Bp, Hp), lambda t: (0, 0)),
            pl.BlockSpec((Bp, Hp), lambda t: (0, 0)),
        ),
        scratch_shapes=[
            pltpu.VMEM((Bp, Hp), jnp.float32),                          # h state
            pltpu.VMEM((Bp, Hp), jnp.float32),                          # c state
        ],
        compiler_params=pltpu.CompilerParams(
            dimension_semantics=("arbitrary",)),
    )(gx, whh_t)

    y = jnp.transpose(y, (1, 0, 2))[:B, :, :H]                          # (B, T, H)
    h_n = hn[None, :B, :H]
    c_n = cn[None, :B, :H]
    return y, (h_n, c_n)


# ------------------------------------------------------------------
# Parameter init (matches the PyTorch module's shapes / p_logit init)
# ------------------------------------------------------------------
def init_params(key, input_size, hidden_size, init_min=0.1, init_max=0.3):
    k1, k2, k3, k4, k5 = jax.random.split(key, 5)
    bound = 1.0 / jnp.sqrt(hidden_size)
    lo = jnp.log(init_min) - jnp.log(1.0 - init_min)
    hi = jnp.log(init_max) - jnp.log(1.0 - init_max)
    return {
        "w_ih": jax.random.uniform(k1, (4 * hidden_size, input_size),
                                   jnp.float32, -bound, bound),
        "w_hh": jax.random.uniform(k2, (4 * hidden_size, hidden_size),
                                   jnp.float32, -bound, bound),
        "b_ih": jax.random.uniform(k3, (4 * hidden_size,), jnp.float32, -bound, bound),
        "b_hh": jax.random.uniform(k4, (4 * hidden_size,), jnp.float32, -bound, bound),
        "p_logit": jax.random.uniform(k5, (1,), jnp.float32, lo, hi),
    }


if __name__ == "__main__":
    B, T, I, H = 2, 8, 16, 32
    key = jax.random.PRNGKey(0)
    pkey, xkey = jax.random.split(key)
    params = init_params(pkey, I, H)
    x = jax.random.normal(xkey, (B, T, I), dtype=jnp.float32)

    y, (h_n, c_n) = lstm_with_cdropout(x, params, use_dropout=True, seed=0)
    jax.block_until_ready((y, h_n, c_n))

    assert y.shape == (B, T, H)
    assert h_n.shape == (1, B, H)
    assert c_n.shape == (1, B, H)
    assert bool(jnp.all(jnp.isfinite(y)))
    print("KERNEL_OK")
</pallas_src>

<mosaic_0001>
module attributes {stable_mosaic.version = 11 : i64} {
  func.func @_proj_kernel(%arg0: i32, %arg1: memref<2xf32, #tpu.memory_space<smem>>, %arg2: memref<64x16xf32, #tpu.memory_space<vmem>>, %arg3: memref<64x16xf32, #tpu.memory_space<vmem>>, %arg4: memref<16x512xbf16, #tpu.memory_space<vmem>>, %arg5: memref<1x512xf32, #tpu.memory_space<vmem>>, %arg6: memref<64x512xf32, #tpu.memory_space<vmem>>) attributes {dimension_semantics = [#tpu.dimension_semantics<parallel>], iteration_bounds = array<i64: 1>, scalar_prefetch = 0 : i64, scratch_operands = 0 : i64, tpu.core_type = #tpu.core_type<tc>, window_params = [{transform_indices = @transform_0, window_bounds = array<i64: 2>}, {transform_indices = @transform_1, window_bounds = array<i64: 64, 16>}, {transform_indices = @transform_2, window_bounds = array<i64: 64, 16>}, {pipeline_mode = #tpu.pipeline_mode<synchronous>, transform_indices = @transform_3, window_bounds = array<i64: 16, 512>}, {pipeline_mode = #tpu.pipeline_mode<synchronous>, transform_indices = @transform_4, window_bounds = array<i64: 1, 512>}, {transform_indices = @transform_5, window_bounds = array<i64: 64, 512>}]} {
    %c0 = arith.constant 0 : index
    %c0_0 = arith.constant 0 : index
    %0 = vector.load %arg3[%c0, %c0_0] : memref<64x16xf32, #tpu.memory_space<vmem>>, vector<64x16xf32>
    %c0_1 = arith.constant 0 : index
    %1 = memref.load %arg1[%c0_1] : memref<2xf32, #tpu.memory_space<smem>>
    %c1 = arith.constant 1 : index
    %2 = memref.load %arg1[%c1] : memref<2xf32, #tpu.memory_space<smem>>
    %c0_2 = arith.constant 0 : index
    %c0_3 = arith.constant 0 : index
    %3 = vector.load %arg2[%c0_2, %c0_3] : memref<64x16xf32, #tpu.memory_space<vmem>>, vector<64x16xf32>
    %cst = arith.constant 1.000000e-07 : f32
    %4 = vector.broadcast %cst : f32 to vector<64x16xf32>
    %5 = arith.addf %3, %4 : vector<64x16xf32>
    %6 = math.log %5 : vector<64x16xf32>
    %7 = vector.broadcast %1 : f32 to vector<64x16xf32>
    %8 = arith.addf %7, %6 : vector<64x16xf32>
    %cst_4 = arith.constant 1.000000e+00 : f32
    %9 = vector.broadcast %cst_4 : f32 to vector<64x16xf32>
    %10 = arith.subf %9, %3 : vector<64x16xf32>
    %cst_5 = arith.constant 1.000000e-07 : f32
    %11 = vector.broadcast %cst_5 : f32 to vector<64x16xf32>
    %12 = arith.addf %10, %11 : vector<64x16xf32>
    %13 = math.log %12 : vector<64x16xf32>
    %14 = arith.subf %8, %13 : vector<64x16xf32>
    %cst_6 = arith.constant 1.000000e+01 : f32
    %15 = vector.broadcast %cst_6 : f32 to vector<64x16xf32>
    %16 = arith.mulf %14, %15 : vector<64x16xf32>
    %17 = arith.negf %16 : vector<64x16xf32>
    %18 = math.exp %17 : vector<64x16xf32>
    %cst_7 = arith.constant 1.000000e+00 : f32
    %19 = vector.broadcast %cst_7 : f32 to vector<64x16xf32>
    %20 = arith.addf %19, %18 : vector<64x16xf32>
    %21 = arith.divf %19, %20 : vector<64x16xf32>
    %cst_8 = arith.constant 1.000000e+00 : f32
    %22 = vector.broadcast %cst_8 : f32 to vector<64x16xf32>
    %23 = arith.subf %22, %21 : vector<64x16xf32>
    %24 = vector.broadcast %2 : f32 to vector<64x16xf32>
    %25 = arith.mulf %23, %24 : vector<64x16xf32>
    %26 = arith.mulf %0, %25 : vector<64x16xf32>
    %27 = arith.truncf %26 : vector<64x16xf32> to vector<64x16xbf16>
    %c0_9 = arith.constant 0 : index
    %c0_10 = arith.constant 0 : index
    %28 = vector.load %arg4[%c0_9, %c0_10] : memref<16x512xbf16, #tpu.memory_space<vmem>>, vector<16x512xbf16>
    %cst_11 = arith.constant dense<0.000000e+00> : vector<64x512xf32>
    %29 = tpu.matmul %27, %28, %cst_11 {dimension_numbers = #tpu.dot_dimension_numbers<[1], [0], [0], [1], [0, 0, 1, 1], [], []>} : vector<64x16xbf16>, vector<16x512xbf16>, vector<64x512xf32> -> vector<64x512xf32>
    %c0_12 = arith.constant 0 : index
    %c0_13 = arith.constant 0 : index
    %30 = vector.load %arg5[%c0_12, %c0_13] : memref<1x512xf32, #tpu.memory_space<vmem>>, vector<1x512xf32>
    %31 = vector.broadcast %30 : vector<1x512xf32> to vector<64x512xf32>
    %32 = arith.addf %29, %31 : vector<64x512xf32>
    %c0_14 = arith.constant 0 : index
    %c0_15 = arith.constant 0 : index
    %33 = vector.load %arg6[%c0_14, %c0_15] : memref<64x512xf32, #tpu.memory_space<vmem>>, vector<64x512xf32>
    tpu.vector_store %arg6[%c0_14, %c0_15], %32 {strides = array<i32>} : memref<64x512xf32, #tpu.memory_space<vmem>>, vector<64x512xf32>,
    return
  }
  func.func @transform_0(%arg0: i32) -> i32 {
    %c0_i32 = arith.constant 0 : i32
    %c0_i32_0 = arith.constant 0 : i32
    return %c0_i32 : i32
  }
  func.func @transform_1(%arg0: i32) -> (i32, i32) {
    %c0_i32 = arith.constant 0 : i32
    %c0_i32_0 = arith.constant 0 : i32
    return %arg0, %c0_i32 : i32, i32
  }
  func.func @transform_2(%arg0: i32) -> (i32, i32) {
    %c0_i32 = arith.constant 0 : i32
    %c0_i32_0 = arith.constant 0 : i32
    return %arg0, %c0_i32 : i32, i32
  }
  func.func @transform_3(%arg0: i32) -> (i32, i32) {
    %c0_i32 = arith.constant 0 : i32
    %c0_i32_0 = arith.constant 0 : i32
    %c0_i32_1 = arith.constant 0 : i32
    return %c0_i32, %c0_i32_0 : i32, i32
  }
  func.func @transform_4(%arg0: i32) -> (i32, i32) {
    %c0_i32 = arith.constant 0 : i32
    %c0_i32_0 = arith.constant 0 : i32
    %c0_i32_1 = arith.constant 0 : i32
    return %c0_i32, %c0_i32_0 : i32, i32
  }
  func.func @transform_5(%arg0: i32) -> (i32, i32) {
    %c0_i32 = arith.constant 0 : i32
    %c0_i32_0 = arith.constant 0 : i32
    return %arg0, %c0_i32 : i32, i32
  }
}

</mosaic_0001>

<bundles_post_ra>
// kernel: tpu_custom_call.1
= control target key start
LH: loop header
LB: loop body
LE: loop exit
PB: predicated region body
PF: predicated region fallthrough
CT: control target
= control target key end

     0   :  { %10 = vsyncpa [#allocation4], 0  ;;  %s757_s0 = inlined_call_operand.vmem [shape: f32[2], index: 0, kind: input, shape index: {}]   ;;  %s758_s1 = inlined_call_operand.vmem [shape: f32[64,16], index: 1, kind: input, shape index: {}]   ;;  %s759_s2 = inlined_call_operand.vmem [shape: f32[64,16], index: 2, kind: input, shape index: {}]   ;;  %s760_s3 = inlined_call_operand.vmem [shape: bf16[16,512], index: 3, kind: input, shape index: {}]   ;;  %s761_s4 = inlined_call_operand.vmem [shape: f32[1,512], index: 4, kind: input, shape index: {}]   ;;  %s762_s5 = inlined_call_operand.hbm [shape: f32[64,512], index: 5, kind: output, shape index: {}]  }
   0x1   :  { %11 = vsyncpa [#allocation3], 0  ;;  %s18_s20 = sshll.u32 %s757_s0, 4  ;;  %s19_s20 = int_to_ptr.vmem [resolvable:$true] %s18_s20 }
   0x2   :  { %s561_s21 = scalar_lea.vmem %s19_s20, 16  ;;  %p566_p1 = scmp.lt.s32.totalorder %s19_s20, %s19_s20 }
   0x3   :  { %p562_p0 = scmp.ne.s32.totalorder %s19_s20, %s561_s21  ;;  %p567_p2 = scmp.lt.s32.totalorder %s561_s21, %s561_s21 }
   0x5   :  { %p568_p3 = por %p567_p2, %p566_p1 }
   0x7   :  { %p569_p4 = pnand %p568_p3, %p562_p0 }
   0x9   :  { %572 = shalt.err (!%p569_p4)
}
   0xa   :  { %s597_s22 = smov [#allocation2]  }
   0xb   :  { %21 = dma.vmem_to_smem %s19_s20, 16, %s597_s22, [#allocation4]  }
   0xc   :  { %593 = dma.done.wait [#allocation4], 16  }
   0xd   :  { %594 = vsyncadd [#allocation4], 4294967280 }
   0xe   :  { %33 = sfence }
   0xf   :  { %v491_v0 = vld [vmem:[%s760_s3 + $0x4] ss:$16 sps:$4 sm:$0xff]   ;;  %v493_v1 = vld [vmem:[%s760_s3 + $0xc] ss:$16 sps:$4 sm:$0xff]   ;;  %v598_v2 = vmov 0   ;;  %s43_s20 = sld [smem:[#allocation2]] }
  0x10   :  { %302 = vmatprep.mubr.bf16.mxu0 %v598_v2  ;;  %375 = vmatprep.mubr.bf16.mxu1 %v598_v2  ;;  %v495_v3 = vld [vmem:[%s760_s3] ss:$16 sps:$4 sm:$0xff]   ;;  %v496_v4 = vld [vmem:[%s760_s3 + $0x8] ss:$16 sps:$4 sm:$0xff]   ;;  %vm257_vm0 = vcmask 130048  }
  0x11   :  { %284 = vmatprep.subr.bf16.mxu0 %v491_v0  ;;  %357 = vmatprep.subr.bf16.mxu1 %v493_v1  ;;  %v45_v5 = vld [vmem:[%s758_s1] sm:$0xff]  ;;  %v46_v6 = vld [vmem:[%s758_s1 + $0x8] sm:$0xff]  ;;  %v47_v11 = vld [vmem:[%s758_s1 + $0x10] sm:$0xff] }
  0x12   :  { %285 = vmatpush1.bf16.msra.mxu0 %v495_v3  ;;  %358 = vmatpush1.bf16.msra.mxu1 %v496_v4  ;;  %v53_v7 = vadd.f32 1e-07, %v45_v5  ;;  %v54_v8 = vadd.f32 1e-07, %v46_v6  ;;  %v86_v9 = vsub.f32 1.0, %v45_v5  ;;  %v87_v10 = vsub.f32 1.0, %v46_v6 }
  0x13   :  { %v48_v14 = vld [vmem:[%s758_s1 + $0x18] sm:$0xff]  ;;  %v88_v15 = vsub.f32 1.0, %v47_v11  ;;  %v55_v16 = vadd.f32 1e-07, %v47_v11  ;;  %v49_v20 = vld [vmem:[%s758_s1 + $0x20] sm:$0xff]  ;;  %v50_v21 = vld [vmem:[%s758_s1 + $0x28] sm:$0xff] }
  0x14   :  { %497 = vlog2.f32 %v53_v7  ;;  %v94_v12 = vadd.f32 1e-07, %v86_v9  ;;  %v95_v13 = vadd.f32 1e-07, %v87_v10  ;;  %v56_v17 = vadd.f32 1e-07, %v48_v14 }
  0x15   :  { %499 = vlog2.f32 %v54_v8  ;;  %v89_v18 = vsub.f32 1.0, %v48_v14  ;;  %v96_v19 = vadd.f32 1e-07, %v88_v15  ;;  %v57_v22 = vadd.f32 1e-07, %v49_v20  ;;  %v51_v23 = vld [vmem:[%s758_s1 + $0x30] sm:$0xff] }
  0x16   :  { %501 = vlog2.f32 %v94_v12  ;;  %v90_v25 = vsub.f32 1.0, %v49_v20  ;;  %v91_v26 = vsub.f32 1.0, %v50_v21  ;;  %v52_v27 = vld [vmem:[%s758_s1 + $0x38] sm:$0xff]  ;;  %v58_v28 = vadd.f32 1e-07, %v50_v21  ;;  %s465_s1 = sld [smem:[#allocation2 + $0x1]] }
  0x17   :  { %503 = vlog2.f32 %v95_v13  ;;  %v97_v24 = vadd.f32 1e-07, %v89_v18  ;;  %v92_v30 = vsub.f32 1.0, %v51_v23  ;;  %v93_v32 = vsub.f32 1.0, %v52_v27 }
  0x18   :  { %505 = vlog2.f32 %v55_v16  ;;  %v98_v29 = vadd.f32 1e-07, %v90_v25  ;;  %v99_v31 = vadd.f32 1e-07, %v91_v26  ;;  %v59_v33 = vadd.f32 1e-07, %v51_v23 }
  0x19   :  { %507 = vlog2.f32 %v56_v17  ;;  %v60_v34 = vadd.f32 1e-07, %v52_v27  ;;  %v100_v35 = vadd.f32 1e-07, %v92_v30  ;;  %v101_v36 = vadd.f32 1e-07, %v93_v32 }
  0x1a   :  { %509 = vlog2.f32 %v96_v19  ;;  %v77_v38 = vstv %s43_s20 }
  0x1b   :  { %511 = vlog2.f32 %v97_v24 }
  0x1c   :  { %513 = vlog2.f32 %v57_v22 }
  0x1d   :  { %515 = vlog2.f32 %v58_v28 }
  0x1e   :  { %517 = vlog2.f32 %v98_v29 }
  0x1f   :  { %519 = vlog2.f32 %v99_v31 }
  0x20   :  { %521 = vlog2.f32 %v59_v33 }
  0x21   :  { %v498_v37 = vpop.eup %497  ;;  %523 = vlog2.f32 %v60_v34 }
  0x22   :  { %v500_v39 = vpop.eup %499  ;;  %v62_v40 = vmul.f32 0.6931472, %v498_v37  ;;  %525 = vlog2.f32 %v100_v35 }
  0x23   :  { %v502_v41 = vpop.eup %501  ;;  %v64_v42 = vmul.f32 0.6931472, %v500_v39  ;;  %527 = vlog2.f32 %v101_v36 }
  0x24   :  { %v504_v43 = vpop.eup %503  ;;  %v78_v44 = vadd.f32 %v77_v38, %v62_v40  ;;  %v103_v45 = vmul.f32 0.6931472, %v502_v41 }
  0x25   :  { %v506_v46 = vpop.eup %505  ;;  %v79_v47 = vadd.f32 %v77_v38, %v64_v42  ;;  %v105_v48 = vmul.f32 0.6931472, %v504_v43 }
  0x26   :  { %v508_v49 = vpop.eup %507  ;;  %v118_v50 = vsub.f32 %v78_v44, %v103_v45  ;;  %v66_v51 = vmul.f32 0.6931472, %v506_v46 }
  0x27   :  { %v510_v52 = vpop.eup %509  ;;  %v119_v53 = vsub.f32 %v79_v47, %v105_v48  ;;  %v68_v54 = vmul.f32 0.6931472, %v508_v49 }
  0x28   :  { %v512_v55 = vpop.eup %511  ;;  %v466_v56 = vmul.f32 -10.0, %v118_v50  ;;  %v80_v57 = vadd.f32 %v77_v38, %v66_v51  ;;  %v107_v58 = vmul.f32 0.6931472, %v510_v52 }
  0x29   :  { %v514_v59 = vpop.eup %513  ;;  %v467_v60 = vmul.f32 -10.0, %v119_v53  ;;  %v81_v61 = vadd.f32 %v77_v38, %v68_v54  ;;  %v109_v62 = vmul.f32 0.6931472, %v512_v55 }
  0x2a   :  { %v516_v63 = vpop.eup %515  ;;  %v142_v0 = vmul.f32 1.442695, %v466_v56  ;;  %v120_v1 = vsub.f32 %v80_v57, %v107_v58  ;;  %v70_v3 = vmul.f32 0.6931472, %v514_v59  ;;  %v190_v56 = vstv %s465_s1  ;;  %v35_v59 = vld [vmem:[%s759_s2] sm:$0xff] }
  0x2b   :  { %v518_v4 = vpop.eup %517  ;;  %v144_v5 = vmul.f32 1.442695, %v467_v60  ;;  %v121_v6 = vsub.f32 %v81_v61, %v109_v62  ;;  %v72_v7 = vmul.f32 0.6931472, %v516_v63  ;;  %v36_v61 = vld [vmem:[%s759_s2 + $0x8] sm:$0xff] }
  0x2c   :  { %v520_v8 = vpop.eup %519  ;;  %529 = vpow2.f32 %v142_v0  ;;  %v468_v9 = vmul.f32 -10.0, %v120_v1  ;;  %v82_v10 = vadd.f32 %v77_v38, %v70_v3  ;;  %v111_v11 = vmul.f32 0.6931472, %v518_v4 }
  0x2d   :  { %v522_v12 = vpop.eup %521  ;;  %531 = vpow2.f32 %v144_v5  ;;  %v469_v13 = vmul.f32 -10.0, %v121_v6  ;;  %v83_v14 = vadd.f32 %v77_v38, %v72_v7  ;;  %v113_v15 = vmul.f32 0.6931472, %v520_v8  ;;  %v37_v7 = vld [vmem:[%s759_s2 + $0x10] sm:$0xff]  ;;  %v38_v8 = vld [vmem:[%s759_s2 + $0x18] sm:$0xff] }
  0x2e   :  { %v524_v16 = vpop.eup %523  ;;  %v146_v17 = vmul.f32 1.442695, %v468_v9  ;;  %v122_v18 = vsub.f32 %v82_v10, %v111_v11  ;;  %v74_v19 = vmul.f32 0.6931472, %v522_v12 }
  0x2f   :  { %v526_v20 = vpop.eup %525  ;;  %v148_v21 = vmul.f32 1.442695, %v469_v13  ;;  %v123_v22 = vsub.f32 %v83_v14, %v113_v15  ;;  %v76_v23 = vmul.f32 0.6931472, %v524_v16 }
  0x30   :  { %v528_v24 = vpop.eup %527  ;;  %533 = vpow2.f32 %v146_v17  ;;  %v470_v25 = vmul.f32 -10.0, %v122_v18  ;;  %v84_v26 = vadd.f32 %v77_v38, %v74_v19  ;;  %v115_v27 = vmul.f32 0.6931472, %v526_v20 }
  0x31   :  { %535 = vpow2.f32 %v148_v21  ;;  %v471_v28 = vmul.f32 -10.0, %v123_v22  ;;  %v85_v29 = vadd.f32 %v77_v38, %v76_v23  ;;  %v117_v30 = vmul.f32 0.6931472, %v528_v24  ;;  %v39_v23 = vld [vmem:[%s759_s2 + $0x20] sm:$0xff]  ;;  %v40_v24 = vld [vmem:[%s759_s2 + $0x28] sm:$0xff] }
  0x32   :  { %v150_v31 = vmul.f32 1.442695, %v470_v25  ;;  %v124_v32 = vsub.f32 %v84_v26, %v115_v27 }
  0x33   :  { %v152_v33 = vmul.f32 1.442695, %v471_v28  ;;  %v125_v34 = vsub.f32 %v85_v29, %v117_v30 }
  0x34   :  { %537 = vpow2.f32 %v150_v31  ;;  %v472_v35 = vmul.f32 -10.0, %v124_v32  ;;  %v41_v32 = vld [vmem:[%s759_s2 + $0x30] sm:$0xff] }
  0x35   :  { %539 = vpow2.f32 %v152_v33  ;;  %v473_v36 = vmul.f32 -10.0, %v125_v34  ;;  %v42_v33 = vld [vmem:[%s759_s2 + $0x38] sm:$0xff] }
  0x36   :  { %v154_v37 = vmul.f32 1.442695, %v472_v35 }
  0x37   :  { %v156_v39 = vmul.f32 1.442695, %v473_v36 }
  0x38   :  { %541 = vpow2.f32 %v154_v37  ;;  %v217_v37 = vlaneseq }
  0x39   :  { %v530_v40 = vpop.eup %529  ;;  %543 = vpow2.f32 %v156_v39 }
  0x3a   :  { %v532_v41 = vpop.eup %531  ;;  %v158_v42 = vadd.f32 1.0, %v530_v40  ;;  %v218_v39 = vshrl.u32 %v217_v37, 7 }
  0x3b   :  { %v159_v43 = vadd.f32 1.0, %v532_v41 }
  0x3c   :  { %545 = vrcp.f32 %v158_v42  ;;  %v219_v40 = vsub.s32 0, %v218_v39  ;;  %v227_v41 = vsub.s32 2, %v218_v39  ;;  %v215_v42 = vld [vmem:[%s761_s4] sm:$0xf]  ;;  %s599_s4 = smov [#allocation5]  }
  0x3d   :  { %v534_v44 = vpop.eup %533  ;;  %547 = vrcp.f32 %v159_v43  ;;  %v223_v43 = vsub.s32 1, %v218_v39  ;;  %s453_s11 = sshll.u32 %s599_s4, 4  ;;  %s454_s11 = int_to_ptr.vmem [resolvable:$true] %s453_s11 }
  0x3e   :  { %v536_v38 = vpop.eup %535  ;;  %v160_v45 = vadd.f32 1.0, %v534_v44  ;;  %v231_v44 = vsub.s32 3, %v218_v39  ;;  %s573_s12 = scalar_lea.vmem %s454_s11, 4096  ;;  %p578_p6 = scmp.lt.s32.totalorder %s454_s11, %s454_s11 }
  0x3f   :  { %v161_v46 = vadd.f32 1.0, %v536_v38  ;;  %v714_v38 = vrot.slane %v215_v42, %v219_v40  ;;  %p574_p5 = scmp.ne.s32.totalorder %s454_s11, %s573_s12  ;;  %p579_p7 = scmp.lt.s32.totalorder %s573_s12, %s573_s12 }
  0x40   :  { %549 = vrcp.f32 %v160_v45  ;;  %v716_v45 = vrot.slane %v215_v42, %v227_v41 }
  0x41   :  { %v538_v47 = vpop.eup %537  ;;  %551 = vrcp.f32 %v161_v46  ;;  %v720_v46 = vrot.slane %v215_v42, %v231_v44  ;;  %p580_p8 = por %p579_p7, %p578_p6 }
  0x42   :  { %v540_v48 = vpop.eup %539  ;;  %v162_v49 = vadd.f32 1.0, %v538_v47 }
  0x43   :  { %v163_v50 = vadd.f32 1.0, %v540_v48  ;;  %p581_p9 = pnand %p580_p8, %p574_p5 }
  0x44   :  { %553 = vrcp.f32 %v162_v49 }
  0x45   :  { %v542_v51 = vpop.eup %541  ;;  %555 = vrcp.f32 %v163_v50 }
  0x46   :  { %v544_v52 = vpop.eup %543  ;;  %v164_v53 = vadd.f32 1.0, %v542_v51 }
  0x47   :  { %v165_v54 = vadd.f32 1.0, %v544_v52 }
  0x48   :  { %557 = vrcp.f32 %v164_v53 }
  0x49   :  { %v546_v55 = vpop.eup %545  ;;  %559 = vrcp.f32 %v165_v54 }
  0x4a   :  { %v548_v57 = vpop.eup %547  ;;  %v182_v58 = vsub.f32 1.0, %v546_v55 }
  0x4b   :  { %v183_v60 = vsub.f32 1.0, %v548_v57 }
  0x4c   :  { %v191_v62 = vmul.f32 %v190_v56, %v182_v58 }
  0x4d   :  { %v550_v63 = vpop.eup %549  ;;  %v192_v0 = vmul.f32 %v190_v56, %v183_v60 }
  0x4e   :  { %v552_v1 = vpop.eup %551  ;;  %v199_v3 = vmul.f32 %v191_v62, %v35_v59  ;;  %v184_v4 = vsub.f32 1.0, %v550_v63 }
  0x4f   :  { %v200_v5 = vmul.f32 %v192_v0, %v36_v61  ;;  %v185_v6 = vsub.f32 1.0, %v552_v1 }
  0x50   :  { %v193_v9 = vmul.f32 %v190_v56, %v184_v4 }
  0x51   :  { %v554_v10 = vpop.eup %553  ;;  %v207_v11 = vpack.c.bf16 %v200_v5, %v199_v3  ;;  %v194_v12 = vmul.f32 %v190_v56, %v185_v6 }
  0x52   :  { %v556_v13 = vpop.eup %555  ;;  %v201_v14 = vmul.f32 %v193_v9, %v37_v7  ;;  %v186_v16 = vsub.f32 1.0, %v554_v10 }
  0x53   :  { %478 = vmatmul.mubr.msk.bf16.vlgmr.msra.gmra.mxu0 %vm257_vm0, %v207_v11  ;;  %482 = vmatmul.mubr.msk.bf16.vlgmr.msra.gmra.mxu1 %vm257_vm0, %v207_v11  ;;  %v202_v15 = vmul.f32 %v194_v12, %v38_v8  ;;  %v187_v17 = vsub.f32 1.0, %v556_v13 }
  0x54   :  { %312 = vmatprep.mubr.bf16.mxu0 %v598_v2  ;;  %385 = vmatprep.mubr.bf16.mxu1 %v598_v2  ;;  %v195_v20 = vmul.f32 %v190_v56, %v186_v16 }
  0x55   :  { %v558_v18 = vpop.eup %557  ;;  %v208_v19 = vpack.c.bf16 %v202_v15, %v201_v14  ;;  %v196_v21 = vmul.f32 %v190_v56, %v187_v17 }
  0x56   :  { %v560_v22 = vpop.eup %559  ;;  %v203_v25 = vmul.f32 %v195_v20, %v39_v23  ;;  %v188_v27 = vsub.f32 1.0, %v558_v18 }
  0x57   :  { %v204_v26 = vmul.f32 %v196_v21, %v40_v24  ;;  %v189_v28 = vsub.f32 1.0, %v560_v22 }
  0x58   :  { %v197_v30 = vmul.f32 %v190_v56, %v188_v27 }
  0x59   :  { %v209_v29 = vpack.c.bf16 %v204_v26, %v203_v25  ;;  %v198_v31 = vmul.f32 %v190_v56, %v189_v28 }
  0x5a   :  { %v205_v34 = vmul.f32 %v197_v30, %v41_v32 }
  0x5b   :  { %479 = vmatmul.mubr.msk.bf16.gmra.mxu0 %vm257_vm0, %v208_v19  ;;  %483 = vmatmul.mubr.msk.bf16.gmra.mxu1 %vm257_vm0, %v208_v19  ;;  %v206_v35 = vmul.f32 %v198_v31, %v42_v33 }
  0x5c   :  { %322 = vmatprep.mubr.bf16.mxu0 %v598_v2  ;;  %395 = vmatprep.mubr.bf16.mxu1 %v598_v2 }
  0x5d   :  { %v210_v36 = vpack.c.bf16 %v206_v35, %v205_v34 }
  0x63   :  { %480 = vmatmul.mubr.msk.bf16.gmra.mxu0 %vm257_vm0, %v209_v29  ;;  %484 = vmatmul.mubr.msk.bf16.gmra.mxu1 %vm257_vm0, %v209_v29 }
  0x64   :  { %332 = vmatprep.mubr.bf16.mxu0 %v598_v2  ;;  %405 = vmatprep.mubr.bf16.mxu1 %v598_v2  ;;  %v718_v2 = vrot.slane %v215_v42, %v223_v43 }
  0x6b   :  { %481 = vmatmul.mubr.msk.bf16.gmra.mxu0 %vm257_vm0, %v210_v36  ;;  %485 = vmatmul.mubr.msk.bf16.gmra.mxu1 %vm257_vm0, %v210_v36 }
 0x113   :  { %v304_v47 = vpop.f32.mrf.mxu0  ;;  %v377_v48 = vpop.f32.mrf.mxu1 }
 0x114   :  { %v305_v49 = vadd.f32 %v304_v47, %v714_v38  ;;  %v378_v50 = vadd.f32 %v377_v48, %v716_v45 }
 0x115   :  { %v306_v51 = vpop.f32.mrf.mxu0  ;;  %v379_v52 = vpop.f32.mrf.mxu1 }
 0x116   :  { %416 = vst [vmem:[#allocation5] sm:$0xff] %v305_v49  ;;  %418 = vst [vmem:[#allocation5 + $0x10] sm:$0xff] %v378_v50  ;;  %v307_v53 = vadd.f32 %v306_v51, %v718_v2  ;;  %v380_v54 = vadd.f32 %v379_v52, %v720_v46 }
 0x117   :  { %v308_v55 = vpop.f32.mrf.mxu0  ;;  %v381_v56 = vpop.f32.mrf.mxu1 }
 0x118   :  { %417 = vst [vmem:[#allocation5 + $0x8] sm:$0xff] %v307_v53  ;;  %419 = vst [vmem:[#allocation5 + $0x18] sm:$0xff] %v380_v54  ;;  %v309_v57 = vadd.f32 %v308_v55, %v714_v38  ;;  %v382_v58 = vadd.f32 %v381_v56, %v716_v45 }
 0x119   :  { %v310_v59 = vpop.f32.mrf.mxu0  ;;  %v383_v60 = vpop.f32.mrf.mxu1 }
 0x11a   :  { %420 = vst [vmem:[#allocation5 + $0x20] sm:$0xff] %v309_v57  ;;  %422 = vst [vmem:[#allocation5 + $0x30] sm:$0xff] %v382_v58  ;;  %v311_v61 = vadd.f32 %v310_v59, %v718_v2  ;;  %v384_v62 = vadd.f32 %v383_v60, %v720_v46 }
 0x11b   :  { %v314_v63 = vpop.f32.mrf.mxu0  ;;  %v387_v0 = vpop.f32.mrf.mxu1 }
 0x11c   :  { %421 = vst [vmem:[#allocation5 + $0x28] sm:$0xff] %v311_v61  ;;  %423 = vst [vmem:[#allocation5 + $0x38] sm:$0xff] %v384_v62  ;;  %v315_v1 = vadd.f32 %v314_v63, %v714_v38  ;;  %v388_v3 = vadd.f32 %v387_v0, %v716_v45 }
 0x11d   :  { %v316_v4 = vpop.f32.mrf.mxu0  ;;  %v389_v5 = vpop.f32.mrf.mxu1 }
 0x11e   :  { %424 = vst [vmem:[#allocation5 + $0x40] sm:$0xff] %v315_v1  ;;  %426 = vst [vmem:[#allocation5 + $0x50] sm:$0xff] %v388_v3  ;;  %v317_v6 = vadd.f32 %v316_v4, %v718_v2  ;;  %v390_v7 = vadd.f32 %v389_v5, %v720_v46 }
 0x11f   :  { %v318_v8 = vpop.f32.mrf.mxu0  ;;  %v391_v9 = vpop.f32.mrf.mxu1 }
 0x120   :  { %425 = vst [vmem:[#allocation5 + $0x48] sm:$0xff] %v317_v6  ;;  %427 = vst [vmem:[#allocation5 + $0x58] sm:$0xff] %v390_v7  ;;  %v319_v10 = vadd.f32 %v318_v8, %v714_v38  ;;  %v392_v11 = vadd.f32 %v391_v9, %v716_v45 }
 0x121   :  { %v320_v12 = vpop.f32.mrf.mxu0  ;;  %v393_v13 = vpop.f32.mrf.mxu1 }
 0x122   :  { %428 = vst [vmem:[#allocation5 + $0x60] sm:$0xff] %v319_v10  ;;  %430 = vst [vmem:[#allocation5 + $0x70] sm:$0xff] %v392_v11  ;;  %v321_v14 = vadd.f32 %v320_v12, %v718_v2  ;;  %v394_v15 = vadd.f32 %v393_v13, %v720_v46 }
 0x123   :  { %v324_v16 = vpop.f32.mrf.mxu0  ;;  %v397_v17 = vpop.f32.mrf.mxu1 }
 0x124   :  { %429 = vst [vmem:[#allocation5 + $0x68] sm:$0xff] %v321_v14  ;;  %431 = vst [vmem:[#allocation5 + $0x78] sm:$0xff] %v394_v15  ;;  %v325_v18 = vadd.f32 %v324_v16, %v714_v38  ;;  %v398_v19 = vadd.f32 %v397_v17, %v716_v45 }
 0x125   :  { %v326_v20 = vpop.f32.mrf.mxu0  ;;  %v399_v21 = vpop.f32.mrf.mxu1 }
 0x126   :  { %432 = vst [vmem:[#allocation5 + $0x80] sm:$0xff] %v325_v18  ;;  %434 = vst [vmem:[#allocation5 + $0x90] sm:$0xff] %v398_v19  ;;  %v327_v22 = vadd.f32 %v326_v20, %v718_v2  ;;  %v400_v23 = vadd.f32 %v399_v21, %v720_v46 }
 0x127   :  { %v328_v24 = vpop.f32.mrf.mxu0  ;;  %v401_v25 = vpop.f32.mrf.mxu1 }
 0x128   :  { %433 = vst [vmem:[#allocation5 + $0x88] sm:$0xff] %v327_v22  ;;  %435 = vst [vmem:[#allocation5 + $0x98] sm:$0xff] %v400_v23  ;;  %v329_v26 = vadd.f32 %v328_v24, %v714_v38  ;;  %v402_v27 = vadd.f32 %v401_v25, %v716_v45 }
 0x129   :  { %v330_v28 = vpop.f32.mrf.mxu0  ;;  %v403_v29 = vpop.f32.mrf.mxu1 }
 0x12a   :  { %436 = vst [vmem:[#allocation5 + $0xa0] sm:$0xff] %v329_v26  ;;  %438 = vst [vmem:[#allocation5 + $0xb0] sm:$0xff] %v402_v27  ;;  %v331_v30 = vadd.f32 %v330_v28, %v718_v2  ;;  %v404_v31 = vadd.f32 %v403_v29, %v720_v46 }
 0x12b   :  { %v334_v32 = vpop.f32.mrf.mxu0  ;;  %v407_v33 = vpop.f32.mrf.mxu1 }
 0x12c   :  { %437 = vst [vmem:[#allocation5 + $0xa8] sm:$0xff] %v331_v30  ;;  %439 = vst [vmem:[#allocation5 + $0xb8] sm:$0xff] %v404_v31  ;;  %v335_v34 = vadd.f32 %v334_v32, %v714_v38  ;;  %v408_v35 = vadd.f32 %v407_v33, %v716_v45 }
 0x12d   :  { %v336_v36 = vpop.f32.mrf.mxu0  ;;  %v409_v37 = vpop.f32.mrf.mxu1 }
 0x12e   :  { %440 = vst [vmem:[#allocation5 + $0xc0] sm:$0xff] %v335_v34  ;;  %442 = vst [vmem:[#allocation5 + $0xd0] sm:$0xff] %v408_v35  ;;  %v337_v39 = vadd.f32 %v336_v36, %v718_v2  ;;  %v410_v40 = vadd.f32 %v409_v37, %v720_v46 }
 0x12f   :  { %v338_v41 = vpop.f32.mrf.mxu0  ;;  %v411_v42 = vpop.f32.mrf.mxu1 }
 0x130   :  { %441 = vst [vmem:[#allocation5 + $0xc8] sm:$0xff] %v337_v39  ;;  %443 = vst [vmem:[#allocation5 + $0xd8] sm:$0xff] %v410_v40  ;;  %v339_v43 = vadd.f32 %v338_v41, %v714_v38  ;;  %v412_v44 = vadd.f32 %v411_v42, %v716_v45 }
 0x131   :  { %v340_v47 = vpop.f32.mrf.mxu0  ;;  %v413_v48 = vpop.f32.mrf.mxu1 }
 0x132   :  { %444 = vst [vmem:[#allocation5 + $0xe0] sm:$0xff] %v339_v43  ;;  %446 = vst [vmem:[#allocation5 + $0xf0] sm:$0xff] %v412_v44  ;;  %v341_v49 = vadd.f32 %v340_v47, %v718_v2  ;;  %v414_v50 = vadd.f32 %v413_v48, %v720_v46 }
 0x134   :  { %445 = vst [vmem:[#allocation5 + $0xe8] sm:$0xff] %v341_v49  ;;  %447 = vst [vmem:[#allocation5 + $0xf8] sm:$0xff] %v414_v50 }
 0x135   :  { %584 = shalt.err (!%p581_p9)
}
 0x136   :  { %s600_s13 = smov 512   ;;  %s601_s14 = smov 32  }
 0x137   :  { %459 = dma.vmem_to_hbm [thread:$0]  %s454_s11, 4096, %s762_s5, [#allocation3], %s600_s13, %s600_s13, %s601_s14  }
 0x138   :  { %595 = dma.done.wait [#allocation3], 4096  }
 0x139   :  { %596 = vsyncadd [#allocation3], 4294963200 }
 0x13a   :  { %463 = vsyncpa [#allocation3], 1 }
 0x13b   :  { %464 = vsyncpa [#allocation4], 1 }

</bundles_post_ra>
